<compile_context>
chip_gen: v5e
topology: v5e:2x2
jax: 0.10.0
libtpu: 0.0.40
codegen_flags: <defaults>
</compile_context>

<pallas_src>
import functools

import jax
import jax.numpy as jnp
from jax import lax
from jax.experimental import pallas as pl
from jax.experimental.pallas import tpu as pltpu


def _round_up(x, m):
    return ((x + m - 1) // m) * m


def _default_tiling():
    """Per-generation (block_batch, vmem_limit_bytes) defaults."""
    try:
        kind = jax.devices()[0].device_kind.lower()
    except Exception:  # pragma: no cover - defensive
        kind = ""
    if "v7" in kind or "tpu7" in kind:
        # 64 MiB physical / TC, 2 TCs share the "parallel" grid: tb=1024 with
        # bf16 W1 + no feature scratch fits in ~48 MiB.
        return 1024, 48 * 1024 * 1024
    if "v6" in kind:
        # 128 MiB physical; amortize per-step overhead with big tiles.
        return 2048, 96 * 1024 * 1024
    if "v5" in kind:
        # 128 MiB physical but 16 MiB scoped default -> explicit limit needed.
        return 1024, 96 * 1024 * 1024
    return 512, 32 * 1024 * 1024


def _resident_spec(block_shape):
    """BlockSpec for a grid-invariant (weight) input: single-buffered."""
    index_map = lambda i: tuple(0 for _ in block_shape)
    try:
        return pl.BlockSpec(block_shape, index_map,
                            pipeline_mode=pl.Buffered(1))
    except TypeError:  # older API without pipeline_mode: default buffering
        return pl.BlockSpec(block_shape, index_map)


def softmax_loss_kernel(batch_total, reps_ref, w1_ref, b1_ref, w2_ref, b2_ref,
                        labels_ref, partial_ref):
    num_reps, tb, dim = reps_ref.shape
    feat = 3 * dim + 1
    w1_rows = w1_ref.shape[0]
    num_labels = w2_ref.shape[1]

    # ---- weighted_aggregate (static Python weights; num_reps is small) ----
    v = reps_ref[0]                                        # [TB, D] f32
    if num_reps > 1:
        prev_weight = 1.0
        u = jnp.zeros((tb, dim), jnp.float32)
        for i in range(1, num_reps):
            weight = 0.75 * prev_weight
            u = u + weight * reps_ref[i]
            prev_weight = prev_weight - weight
    else:
        u = v

    # ---- cosine similarity via rsqrt (EUP path) ----
    # max(uu*vv, 1e-12) == (max(|u||v|, 1e-6))^2, so eps semantics match.
    uu = jnp.sum(u * u, axis=1, keepdims=True)             # [TB, 1]
    vv = jnp.sum(v * v, axis=1, keepdims=True)
    uv = jnp.sum(u * v, axis=1, keepdims=True)
    cosine = uv * lax.rsqrt(jnp.maximum(uu * vv, 1e-12))

    diff = jnp.abs(u - v)
    b1 = b1_ref[...]                                       # [1, H]

    if dim % 128 == 0:
        # Lane-aligned D: no feature staging.  Three K=D bf16 partial matmuls
        # on sliced W1 rows (f32 accumulation) + VPU outer product for cosine.
        h = jnp.dot(u.astype(jnp.bfloat16), w1_ref[0:dim, :],
                    preferred_element_type=jnp.float32)
        h = h + jnp.dot(v.astype(jnp.bfloat16), w1_ref[dim:2 * dim, :],
                        preferred_element_type=jnp.float32)
        h = h + jnp.dot(diff.astype(jnp.bfloat16), w1_ref[2 * dim:3 * dim, :],
                        preferred_element_type=jnp.float32)
        h = h + cosine * w1_ref[3 * dim:3 * dim + 1, :].astype(jnp.float32)
        h = h + b1
    else:
        # Small D: one lane-padded fused-K bf16 matmul.  Build the padded
        # feature block in registers (single concat; no VMEM scratch
        # roundtrip, no masked sub-128-lane stores).  W1 is zero-padded to
        # w1_rows in the wrapper so the extra lanes contribute nothing.
        pieces = [u, v, diff, cosine]
        pad_w = w1_rows - feat
        if pad_w > 0:
            pieces.append(jnp.zeros((tb, pad_w), jnp.float32))
        feat_blk = jnp.concatenate(pieces, axis=1).astype(jnp.bfloat16)
        h = jnp.dot(feat_blk, w1_ref[...],
                    preferred_element_type=jnp.float32) + b1
    h = jnp.maximum(h, 0.0)

    # Second matmul is tiny (H x L); keep f32 operands for precision headroom.
    logits = jnp.dot(h, w2_ref[...],
                     preferred_element_type=jnp.float32) + b2_ref[...]

    # ---- CrossEntropyLoss partial sum for this batch tile ----
    m = jnp.max(logits, axis=1, keepdims=True)
    lse = m + jnp.log(jnp.sum(jnp.exp(logits - m), axis=1, keepdims=True))
    label_ids = labels_ref[...]                            # [TB, 1] int32
    class_iota = lax.broadcasted_iota(jnp.int32, (tb, num_labels), 1)
    picked = jnp.sum(jnp.where(class_iota == label_ids, logits, 0.0),
                     axis=1, keepdims=True)                # [TB, 1]
    per_sample = lse - picked                              # [TB, 1]

    # NOTE: ragged final tile -- OOB-padded rows may hold garbage (even NaN)
    # logits.  jnp.where is a true select, so masking HERE (before the tile
    # sum) guarantees those rows contribute exactly 0.  Do not move this mask
    # after any arithmetic combine.
    row = pl.program_id(0) * tb + lax.broadcasted_iota(jnp.int32, (tb, 1), 0)
    per_sample = jnp.where(row < batch_total, per_sample, 0.0)

    # Lane-dense per-tile partial-sum block (per-core safe with "parallel").
    tile_sum = jnp.sum(per_sample, axis=0, keepdims=True)  # (1, 1)
    partial_ref[...] = jnp.broadcast_to(tile_sum.reshape(1, 1, 1),
                                        partial_ref.shape)


def softmax_loss(reps, w1, b1, w2, b2, labels, *, block_batch=None,
                 vmem_limit_bytes=None):
    """reps: [R, B, D] float32; w1: [3D+1, H]; b1: [H]; w2: [H, L]; b2: [L];
    labels: [B] int32. Returns scalar mean cross-entropy loss."""
    num_reps, batch, dim = reps.shape
    feat = 3 * dim + 1
    hidden = w1.shape[1]
    num_labels = w2.shape[1]
    assert w1.shape[0] == feat

    def_bb, def_vmem = _default_tiling()
    if block_batch is None:
        block_batch = def_bb
    if vmem_limit_bytes is None:
        vmem_limit_bytes = def_vmem
    assert block_batch % 8 == 0

    # W1 operand for the MXU goes in bf16 (accumulation stays f32 in-kernel).
    if dim % 128 == 0:
        w1p = w1.astype(jnp.bfloat16)          # sliced in-kernel, no padding
    else:
        feat_pad = _round_up(feat, 128)        # lane-dense fused K
        w1p = jnp.pad(w1.astype(jnp.float32),
                      ((0, feat_pad - feat), (0, 0))).astype(jnp.bfloat16)
    w1_rows = w1p.shape[0]

    # Batch tile: whole batch if it fits one block, else a multiple-of-8 tile.
    tb = batch if batch <= block_batch else block_batch
    num_tiles = pl.cdiv(batch, tb)

    kernel = functools.partial(softmax_loss_kernel, batch)

    grid_spec = pltpu.PrefetchScalarGridSpec(
        num_scalar_prefetch=0,
        grid=(num_tiles,),
        in_specs=[
            pl.BlockSpec((num_reps, tb, dim), lambda i: (0, i, 0)),   # reps
            _resident_spec((w1_rows, hidden)),                        # W1 bf16
            _resident_spec((1, hidden)),                              # b1
            _resident_spec((hidden, num_labels)),                     # W2
            _resident_spec((1, num_labels)),                          # b2
            pl.BlockSpec((tb, 1), lambda i: (i, 0)),                  # labels
        ],
        out_specs=pl.BlockSpec((1, 8, 128), lambda i: (i, 0, 0)),     # partials
    )

    partials = pl.pallas_call(
        kernel,
        out_shape=jax.ShapeDtypeStruct((num_tiles, 8, 128), jnp.float32),
        grid_spec=grid_spec,
        compiler_params=pltpu.CompilerParams(
            dimension_semantics=("parallel",),   # batch tiles across TCs
            vmem_limit_bytes=vmem_limit_bytes,
        ),
    )(
        # reps stay f32; bf16 streaming is a v5e bandwidth-only option and
        # would add input rounding on top of the bf16 matmul operands.
        reps.astype(jnp.float32),
        w1p,
        b1.astype(jnp.float32).reshape(1, hidden),
        w2.astype(jnp.float32),
        b2.astype(jnp.float32).reshape(1, num_labels),
        labels.astype(jnp.int32).reshape(batch, 1),
    )
    return jnp.sum(partials[:, 0, 0]) / batch


def softmax_loss_ref(reps, w1, b1, w2, b2, labels):
    """Pure-JAX reference mirroring the PyTorch module (f32 throughout)."""
    reps = [reps[i] for i in range(reps.shape[0])]
    v = reps[0]
    prev_weight = 1.0
    if len(reps) > 1:
        scaled = []
        for i in range(1, len(reps)):
            weight = 0.75 * prev_weight
            scaled.append(reps[i] * weight)
            prev_weight -= weight
        u = jnp.sum(jnp.stack(scaled), axis=0)
    else:
        u = reps[0]
    dot = jnp.sum(u * v, axis=1, keepdims=True)
    nu = jnp.sqrt(jnp.sum(u * u, axis=1, keepdims=True))
    nv = jnp.sqrt(jnp.sum(v * v, axis=1, keepdims=True))
    cos = dot / jnp.maximum(nu * nv, 1e-6)
    feats = jnp.concatenate([u, v, jnp.abs(u - v), cos], axis=1)
    h = jnp.maximum(feats @ w1 + b1, 0.0)
    logits = h @ w2 + b2
    logp = jax.nn.log_softmax(logits, axis=-1)
    nll = -jnp.take_along_axis(logp, labels[:, None], axis=1)
    return jnp.mean(nll)


if __name__ == "__main__":
    hidden = 256        # fixed by the module
    num_labels = 3

    def make_params(key, dim):
        feat_dim = 3 * dim + 1   # u, v, |u-v|, cosine
        k1, k2, k3, k4 = jax.random.split(key, 4)
        w1 = 0.05 * jax.random.normal(k1, (feat_dim, hidden), dtype=jnp.float32)
        b1 = 0.05 * jax.random.normal(k2, (hidden,), dtype=jnp.float32)
        w2 = 0.05 * jax.random.normal(k3, (hidden, num_labels), dtype=jnp.float32)
        b2 = 0.05 * jax.random.normal(k4, (num_labels,), dtype=jnp.float32)
        return w1, b1, w2, b2

    def run_case(seed, num_reps, batch, dim, block_batch):
        key = jax.random.PRNGKey(seed)
        kp, kr, kl = jax.random.split(key, 3)
        w1, b1, w2, b2 = make_params(kp, dim)
        reps = jax.random.normal(kr, (num_reps, batch, dim), dtype=jnp.float32)
        labels = jax.random.randint(kl, (batch,), 0, num_labels, jnp.int32)
        loss = jax.block_until_ready(
            softmax_loss(reps, w1, b1, w2, b2, labels, block_batch=block_batch))
        ref = jax.block_until_ready(softmax_loss_ref(reps, w1, b1, w2, b2, labels))
        assert jnp.isfinite(loss), "kernel produced non-finite loss"
        # bf16 MXU operands on the W1 matmul (f32 accumulation): 2e-3 abs tol.
        assert abs(float(loss) - float(ref)) < 2e-3, (dim, batch,
                                                      float(loss), float(ref))

    # Case 1: small D (lane-padded fused-K path), single tile.
    run_case(0, num_reps=3, batch=8, dim=32, block_batch=512)
    # Case 2: small D, multi-tile grid with masked ragged final tile.
    run_case(1, num_reps=3, batch=20, dim=32, block_batch=8)
    # Case 3: lane-aligned D=128 (direct sliced-W1 path, no feature staging),
    #         multi-tile grid.
    run_case(2, num_reps=4, batch=16, dim=128, block_batch=8)

    print("KERNEL_OK")
</pallas_src>

<mosaic_0001>
module attributes {stable_mosaic.version = 11 : i64} {
  func.func @softmax_loss_kernel(%arg0: i32, %arg1: memref<3x8x32xf32, #tpu.memory_space<vmem>>, %arg2: memref<128x256xbf16, #tpu.memory_space<vmem>>, %arg3: memref<1x256xf32, #tpu.memory_space<vmem>>, %arg4: memref<256x3xf32, #tpu.memory_space<vmem>>, %arg5: memref<1x3xf32, #tpu.memory_space<vmem>>, %arg6: memref<8x1xi32, #tpu.memory_space<vmem>>, %arg7: memref<1x8x128xf32, #tpu.memory_space<vmem>>) attributes {dimension_semantics = [#tpu.dimension_semantics<parallel>], iteration_bounds = array<i64: 1>, scalar_prefetch = 0 : i64, scratch_operands = 0 : i64, tpu.core_type = #tpu.core_type<tc>, window_params = [{transform_indices = @transform_0, window_bounds = array<i64: 3, 8, 32>}, {pipeline_mode = #tpu.pipeline_mode<synchronous>, transform_indices = @transform_1, window_bounds = array<i64: 128, 256>}, {pipeline_mode = #tpu.pipeline_mode<synchronous>, transform_indices = @transform_2, window_bounds = array<i64: 1, 256>}, {pipeline_mode = #tpu.pipeline_mode<synchronous>, transform_indices = @transform_3, window_bounds = array<i64: 256, 3>}, {pipeline_mode = #tpu.pipeline_mode<synchronous>, transform_indices = @transform_4, window_bounds = array<i64: 1, 3>}, {transform_indices = @transform_5, window_bounds = array<i64: 8, 1>}, {transform_indices = @transform_6, window_bounds = array<i64: 1, 8, 128>}]} {
    %c0 = arith.constant 0 : index
    %c0_0 = arith.constant 0 : index
    %c0_1 = arith.constant 0 : index
    %0 = vector.load %arg1[%c0, %c0_0, %c0_1] : memref<3x8x32xf32, #tpu.memory_space<vmem>>, vector<1x8x32xf32>
    %1 = vector.shape_cast %0 : vector<1x8x32xf32> to vector<8x32xf32>
    %cst = arith.constant 0.000000e+00 : f32
    %2 = vector.broadcast %cst : f32 to vector<8x32xf32>
    %c1 = arith.constant 1 : index
    %c0_2 = arith.constant 0 : index
    %c0_3 = arith.constant 0 : index
    %3 = vector.load %arg1[%c1, %c0_2, %c0_3] : memref<3x8x32xf32, #tpu.memory_space<vmem>>, vector<1x8x32xf32>
    %4 = vector.shape_cast %3 : vector<1x8x32xf32> to vector<8x32xf32>
    %cst_4 = arith.constant 7.500000e-01 : f32
    %5 = vector.broadcast %cst_4 : f32 to vector<8x32xf32>
    %6 = arith.mulf %5, %4 : vector<8x32xf32>
    %7 = arith.addf %2, %6 : vector<8x32xf32>
    %c2 = arith.constant 2 : index
    %c0_5 = arith.constant 0 : index
    %c0_6 = arith.constant 0 : index
    %8 = vector.load %arg1[%c2, %c0_5, %c0_6] : memref<3x8x32xf32, #tpu.memory_space<vmem>>, vector<1x8x32xf32>
    %9 = vector.shape_cast %8 : vector<1x8x32xf32> to vector<8x32xf32>
    %cst_7 = arith.constant 1.875000e-01 : f32
    %10 = vector.broadcast %cst_7 : f32 to vector<8x32xf32>
    %11 = arith.mulf %10, %9 : vector<8x32xf32>
    %12 = arith.addf %7, %11 : vector<8x32xf32>
    %13 = arith.mulf %12, %12 : vector<8x32xf32>
    %cst_8 = arith.constant dense<0.000000e+00> : vector<8xf32>
    %14 = vector.multi_reduction <add>, %13, %cst_8 [1] : vector<8x32xf32> to vector<8xf32>
    %15 = vector.shape_cast %14 : vector<8xf32> to vector<8x1xf32>
    %16 = arith.mulf %1, %1 : vector<8x32xf32>
    %cst_9 = arith.constant dense<0.000000e+00> : vector<8xf32>
    %17 = vector.multi_reduction <add>, %16, %cst_9 [1] : vector<8x32xf32> to vector<8xf32>
    %18 = vector.shape_cast %17 : vector<8xf32> to vector<8x1xf32>
    %19 = arith.mulf %12, %1 : vector<8x32xf32>
    %cst_10 = arith.constant dense<0.000000e+00> : vector<8xf32>
    %20 = vector.multi_reduction <add>, %19, %cst_10 [1] : vector<8x32xf32> to vector<8xf32>
    %21 = vector.shape_cast %20 : vector<8xf32> to vector<8x1xf32>
    %22 = arith.mulf %15, %18 : vector<8x1xf32>
    %cst_11 = arith.constant 9.99999996E-13 : f32
    %23 = vector.broadcast %cst_11 : f32 to vector<8x1xf32>
    %24 = arith.maximumf %22, %23 : vector<8x1xf32>
    %25 = math.rsqrt %24 : vector<8x1xf32>
    %26 = arith.mulf %21, %25 : vector<8x1xf32>
    %27 = arith.subf %12, %1 : vector<8x32xf32>
    %28 = math.absf %27 : vector<8x32xf32>
    %c0_12 = arith.constant 0 : index
    %c0_13 = arith.constant 0 : index
    %29 = vector.load %arg3[%c0_12, %c0_13] : memref<1x256xf32, #tpu.memory_space<vmem>>, vector<1x256xf32>
    %cst_14 = arith.constant 0.000000e+00 : f32
    %30 = vector.broadcast %cst_14 : f32 to vector<8x31xf32>
    %31 = tpu.concatenate %12, %1, %28, %26, %30 in 1 : vector<8x32xf32>, vector<8x32xf32>, vector<8x32xf32>, vector<8x1xf32>, vector<8x31xf32> -> vector<8x128xf32>
    %32 = arith.truncf %31 : vector<8x128xf32> to vector<8x128xbf16>
    %c0_15 = arith.constant 0 : index
    %c0_16 = arith.constant 0 : index
    %33 = vector.load %arg2[%c0_15, %c0_16] : memref<128x256xbf16, #tpu.memory_space<vmem>>, vector<128x256xbf16>
    %cst_17 = arith.constant dense<0.000000e+00> : vector<8x256xf32>
    %34 = tpu.matmul %32, %33, %cst_17 {dimension_numbers = #tpu.dot_dimension_numbers<[1], [0], [0], [1], [0, 0, 1, 1], [], []>} : vector<8x128xbf16>, vector<128x256xbf16>, vector<8x256xf32> -> vector<8x256xf32>
    %35 = vector.broadcast %29 : vector<1x256xf32> to vector<8x256xf32>
    %36 = arith.addf %34, %35 : vector<8x256xf32>
    %cst_18 = arith.constant 0.000000e+00 : f32
    %37 = vector.broadcast %cst_18 : f32 to vector<8x256xf32>
    %38 = arith.maximumf %36, %37 : vector<8x256xf32>
    %c0_19 = arith.constant 0 : index
    %c0_20 = arith.constant 0 : index
    %39 = vector.load %arg4[%c0_19, %c0_20] : memref<256x3xf32, #tpu.memory_space<vmem>>, vector<256x3xf32>
    %cst_21 = arith.constant dense<0.000000e+00> : vector<8x3xf32>
    %40 = tpu.matmul %38, %39, %cst_21 {dimension_numbers = #tpu.dot_dimension_numbers<[1], [0], [0], [1], [0, 0, 1, 1], [], []>} : vector<8x256xf32>, vector<256x3xf32>, vector<8x3xf32> -> vector<8x3xf32>
    %c0_22 = arith.constant 0 : index
    %c0_23 = arith.constant 0 : index
    %41 = vector.load %arg5[%c0_22, %c0_23] : memref<1x3xf32, #tpu.memory_space<vmem>>, vector<1x3xf32>
    %42 = vector.broadcast %41 : vector<1x3xf32> to vector<8x3xf32>
    %43 = arith.addf %40, %42 : vector<8x3xf32>
    %cst_24 = arith.constant dense<0xFF800000> : vector<8xf32>
    %44 = vector.multi_reduction <maximumf>, %43, %cst_24 [1] : vector<8x3xf32> to vector<8xf32>
    %45 = vector.shape_cast %44 : vector<8xf32> to vector<8x1xf32>
    %46 = vector.broadcast %45 : vector<8x1xf32> to vector<8x3xf32>
    %47 = arith.subf %43, %46 : vector<8x3xf32>
    %48 = math.exp %47 : vector<8x3xf32>
    %cst_25 = arith.constant dense<0.000000e+00> : vector<8xf32>
    %49 = vector.multi_reduction <add>, %48, %cst_25 [1] : vector<8x3xf32> to vector<8xf32>
    %50 = vector.shape_cast %49 : vector<8xf32> to vector<8x1xf32>
    %51 = math.log %50 : vector<8x1xf32>
    %52 = arith.addf %45, %51 : vector<8x1xf32>
    %c0_26 = arith.constant 0 : index
    %c0_27 = arith.constant 0 : index
    %53 = vector.load %arg6[%c0_26, %c0_27] : memref<8x1xi32, #tpu.memory_space<vmem>>, vector<8x1xi32>
    %54 = tpu.iota {dimensions = array<i32: 1>} : vector<8x3xi32>
    %55 = vector.broadcast %53 : vector<8x1xi32> to vector<8x3xi32>
    %56 = arith.cmpi eq, %54, %55 : vector<8x3xi32>
    %cst_28 = arith.constant 0.000000e+00 : f32
    %57 = vector.broadcast %cst_28 : f32 to vector<8x3xf32>
    %58 = arith.select %56, %43, %57 : vector<8x3xi1>, vector<8x3xf32>
    %cst_29 = arith.constant dense<0.000000e+00> : vector<8xf32>
    %59 = vector.multi_reduction <add>, %58, %cst_29 [1] : vector<8x3xf32> to vector<8xf32>
    %60 = vector.shape_cast %59 : vector<8xf32> to vector<8x1xf32>
    %61 = arith.subf %52, %60 : vector<8x1xf32>
    %c8_i32 = arith.constant 8 : i32
    %62 = arith.muli %arg0, %c8_i32 : i32
    %63 = tpu.iota {dimensions = array<i32: 0>} : vector<8x1xi32>
    %64 = vector.broadcast %62 : i32 to vector<8x1xi32>
    %65 = arith.addi %64, %63 : vector<8x1xi32>
    %c8_i32_30 = arith.constant 8 : i32
    %66 = vector.broadcast %c8_i32_30 : i32 to vector<8x1xi32>
    %67 = arith.cmpi slt, %65, %66 : vector<8x1xi32>
    %cst_31 = arith.constant 0.000000e+00 : f32
    %68 = vector.broadcast %cst_31 : f32 to vector<8x1xf32>
    %69 = arith.select %67, %61, %68 : vector<8x1xi1>, vector<8x1xf32>
    %cst_32 = arith.constant dense<0.000000e+00> : vector<1xf32>
    %70 = vector.multi_reduction <add>, %69, %cst_32 [0] : vector<8x1xf32> to vector<1xf32>
    %71 = vector.shape_cast %70 : vector<1xf32> to vector<1x1xf32>
    %72 = vector.shape_cast %71 : vector<1x1xf32> to vector<1x1x1xf32>
    %73 = vector.shape_cast %72 : vector<1x1x1xf32> to vector<1x1x1xf32>
    %74 = vector.broadcast %73 : vector<1x1x1xf32> to vector<1x8x128xf32>
    %c0_33 = arith.constant 0 : index
    %c0_34 = arith.constant 0 : index
    %c0_35 = arith.constant 0 : index
    %75 = vector.load %arg7[%c0_33, %c0_34, %c0_35] : memref<1x8x128xf32, #tpu.memory_space<vmem>>, vector<1x8x128xf32>
    tpu.vector_store %arg7[%c0_33, %c0_34, %c0_35], %74 {strides = array<i32>} : memref<1x8x128xf32, #tpu.memory_space<vmem>>, vector<1x8x128xf32>,
    return
  }
  func.func @transform_0(%arg0: i32) -> (i32, i32, i32) {
    %c0_i32 = arith.constant 0 : i32
    %c0_i32_0 = arith.constant 0 : i32
    %c0_i32_1 = arith.constant 0 : i32
    return %c0_i32, %arg0, %c0_i32_0 : i32, i32, i32
  }
  func.func @transform_1(%arg0: i32) -> (i32, i32) {
    %c0_i32 = arith.constant 0 : i32
    %c0_i32_0 = arith.constant 0 : i32
    %c0_i32_1 = arith.constant 0 : i32
    return %c0_i32, %c0_i32_0 : i32, i32
  }
  func.func @transform_2(%arg0: i32) -> (i32, i32) {
    %c0_i32 = arith.constant 0 : i32
    %c0_i32_0 = arith.constant 0 : i32
    %c0_i32_1 = arith.constant 0 : i32
    return %c0_i32, %c0_i32_0 : i32, i32
  }
  func.func @transform_3(%arg0: i32) -> (i32, i32) {
    %c0_i32 = arith.constant 0 : i32
    %c0_i32_0 = arith.constant 0 : i32
    %c0_i32_1 = arith.constant 0 : i32
    return %c0_i32, %c0_i32_0 : i32, i32
  }
  func.func @transform_4(%arg0: i32) -> (i32, i32) {
    %c0_i32 = arith.constant 0 : i32
    %c0_i32_0 = arith.constant 0 : i32
    %c0_i32_1 = arith.constant 0 : i32
    return %c0_i32, %c0_i32_0 : i32, i32
  }
  func.func @transform_5(%arg0: i32) -> (i32, i32) {
    %c0_i32 = arith.constant 0 : i32
    %c0_i32_0 = arith.constant 0 : i32
    return %arg0, %c0_i32 : i32, i32
  }
  func.func @transform_6(%arg0: i32) -> (i32, i32, i32) {
    %c0_i32 = arith.constant 0 : i32
    %c0_i32_0 = arith.constant 0 : i32
    %c0_i32_1 = arith.constant 0 : i32
    return %arg0, %c0_i32, %c0_i32_0 : i32, i32, i32
  }
}

</mosaic_0001>

<bundles_post_ra>
// kernel: tpu_custom_call.1
= control target key start
LH: loop header
LB: loop body
LE: loop exit
PB: predicated region body
PF: predicated region fallthrough
CT: control target
= control target key end

     0   :  { %s727_s0 = inlined_call_operand.vmem [shape: f32[3,8,32], index: 0, kind: input, shape index: {}]   ;;  %s728_s1 = inlined_call_operand.vmem [shape: bf16[128,256], index: 1, kind: input, shape index: {}]   ;;  %s729_s2 = inlined_call_operand.vmem [shape: f32[1,256], index: 2, kind: input, shape index: {}]   ;;  %s730_s3 = inlined_call_operand.vmem [shape: f32[256,3], index: 3, kind: input, shape index: {}]   ;;  %s731_s4 = inlined_call_operand.vmem [shape: f32[1,3], index: 4, kind: input, shape index: {}]   ;;  %s732_s5 = inlined_call_operand.vmem [shape: s32[8,1], index: 5, kind: input, shape index: {}]   ;;  %s733_s6 = inlined_call_operand.hbm [shape: f32[1,8,128], index: 6, kind: output, shape index: {}]  }
   0x1   :  { %v338_v0 = vld [vmem:[%s727_s0 + $0x8] sm:$0xff]  ;;  %v339_v1 = vld [vmem:[%s727_s0 + $0x10] sm:$0xff] }
   0x2   :  { %v27_v2 = vmul.f32 0.75, %v338_v0  ;;  %v31_v3 = vmul.f32 0.1875, %v339_v1 }
   0x3   :  { %11 = vsyncpa [#allocation3], 0  ;;  %v24_v4 = vld [vmem:[%s727_s0] sm:$0xff]  ;;  %vm34_vm0 = vcmask 261120   ;;  %s464_s27 = smov 64   ;;  %s465_s0 = smov 32  }
   0x4   :  { %v512_v5 = vadd.f32 %v31_v3, %v27_v2  ;;  %v38_v12 = vmul.f32 %v24_v4, %v24_v4  ;;  %v398_v14 = vld [vmem:[%s728_s1 + $0x70] sm:$0xf]  ;;  %v425_v15 = vld [vmem:[%s728_s1 + $0x74] sm:$0xf0]  ;;  %v424_v16 = vld [vmem:[%s728_s1 + $0x74] sm:$0xf] }
   0x5   :  { %v399_v17 = vor.u32 %v425_v15, %v398_v14  ;;  %v400_v18 = vld [vmem:[%s728_s1 + $0x78] sm:$0xf0]  ;;  %v390_v20 = vld [vmem:[%s728_s1 + $0x60] sm:$0xf]  ;;  %v423_v21 = vld [vmem:[%s728_s1 + $0x64] sm:$0xf0] }
   0x6   :  { %v33_v6 = vmul.f32 %v512_v5, %v512_v5  ;;  %v42_v7 = vmul.f32 %v512_v5, %v24_v4  ;;  %v59_v8 = vsub.f32 %v512_v5, %v24_v4  ;;  %v39_v13 = vsel %vm34_vm0, %v38_v12, 0.0  ;;  %v422_v22 = vld [vmem:[%s728_s1 + $0x64] sm:$0xf]  ;;  %v392_v24 = vld [vmem:[%s728_s1 + $0x68] sm:$0xf0]  ;;  %v222_v63 = vld [vmem:[%s730_s3 + $0x78] sm:$0xff] }
   0x7   :  { %v403_v19 = vor.u32 %v424_v16, %v400_v18  ;;  %179 = vmatpush.bf16.msra.mxu0 %v399_v17  ;;  %v391_v23 = vor.u32 %v423_v21, %v390_v20  ;;  %v395_v25 = vor.u32 %v422_v22, %v392_v24  ;;  %v382_v26 = vld [vmem:[%s728_s1 + $0x50] sm:$0xf]  ;;  %v421_v27 = vld [vmem:[%s728_s1 + $0x54] sm:$0xf0]  ;;  %v420_v28 = vld [vmem:[%s728_s1 + $0x54] sm:$0xf]  ;;  %243 = vmatpush.msra.mxu2 %v222_v63  ;;  %v297_v63 = vlaneseq }
   0x8   :  { %v35_v9 = vsel %vm34_vm0, %v33_v6, 0.0  ;;  %v43_v10 = vsel %vm34_vm0, %v42_v7, 0.0  ;;  %v60_v11 = vand.u32 2147483647, %v59_v8  ;;  %v383_v29 = vor.u32 %v421_v27, %v382_v26  ;;  %v384_v30 = vld [vmem:[%s728_s1 + $0x58] sm:$0xf0] }
   0x9   :  { %36 = vadd.xlane.f32.xlu0 %v35_v9  ;;  %44 = vadd.xlane.f32.xlu1 %v43_v10  ;;  %v387_v31 = vor.u32 %v420_v28, %v384_v30  ;;  %v374_v32 = vld [vmem:[%s728_s1 + $0x40] sm:$0xf]  ;;  %v419_v33 = vld [vmem:[%s728_s1 + $0x44] sm:$0xf0]  ;;  %v418_v34 = vld [vmem:[%s728_s1 + $0x44] sm:$0xf] }
   0xa   :  { %67 = vrot.lane.b32.xlu2 %v60_v11, %s464_s27  ;;  %192 = vmatpush.bf16.msra.mxu1 %v403_v19  ;;  %v375_v35 = vor.u32 %v419_v33, %v374_v32  ;;  %v376_v36 = vld [vmem:[%s728_s1 + $0x48] sm:$0xf0]  ;;  %v366_v38 = vld [vmem:[%s728_s1 + $0x30] sm:$0xf]  ;;  %v417_v39 = vld [vmem:[%s728_s1 + $0x34] sm:$0xf0] }
   0xb   :  { %180 = vmatpush.bf16.msra.mxu0 %v391_v23  ;;  %v379_v37 = vor.u32 %v418_v34, %v376_v36  ;;  %v416_v40 = vld [vmem:[%s728_s1 + $0x34] sm:$0xf]  ;;  %v367_v41 = vor.u32 %v417_v39, %v366_v38  ;;  %v368_v42 = vld [vmem:[%s728_s1 + $0x38] sm:$0xf0]  ;;  %v358_v44 = vld [vmem:[%s728_s1 + $0x20] sm:$0xf] }
   0xc   :  { %v371_v43 = vor.u32 %v416_v40, %v368_v42  ;;  %v415_v45 = vld [vmem:[%s728_s1 + $0x24] sm:$0xf0]  ;;  %v414_v46 = vld [vmem:[%s728_s1 + $0x24] sm:$0xf]  ;;  %v360_v48 = vld [vmem:[%s728_s1 + $0x28] sm:$0xf0] }
   0xd   :  { %v359_v47 = vor.u32 %v415_v45, %v358_v44  ;;  %v363_v49 = vor.u32 %v414_v46, %v360_v48  ;;  %v350_v50 = vld [vmem:[%s728_s1 + $0x10] sm:$0xf]  ;;  %v413_v51 = vld [vmem:[%s728_s1 + $0x14] sm:$0xf0]  ;;  %v412_v52 = vld [vmem:[%s728_s1 + $0x14] sm:$0xf] }
   0xe   :  { %193 = vmatpush.bf16.msra.mxu1 %v395_v25  ;;  %v351_v53 = vor.u32 %v413_v51, %v350_v50  ;;  %v352_v54 = vld [vmem:[%s728_s1 + $0x18] sm:$0xf0]  ;;  %v342_v56 = vld [vmem:[%s728_s1] sm:$0xf]  ;;  %v411_v57 = vld [vmem:[%s728_s1 + $0x4] sm:$0xf0] }
   0xf   :  { %181 = vmatpush.bf16.msra.mxu0 %v383_v29  ;;  %v355_v55 = vor.u32 %v412_v52, %v352_v54  ;;  %v343_v58 = vor.u32 %v411_v57, %v342_v56  ;;  %v410_v59 = vld [vmem:[%s728_s1 + $0x4] sm:$0xf]  ;;  %v344_v60 = vld [vmem:[%s728_s1 + $0x8] sm:$0xf0]  ;;  %v238_v0 = vld [vmem:[%s730_s3 + $0xf8] sm:$0xff]  ;;  %vm71_vm2 = vcmask 523264  }
  0x10   :  { %v347_v62 = vor.u32 %v410_v59, %v344_v60  ;;  %v221_v1 = vld [vmem:[%s730_s3 + $0x70] sm:$0xff]  ;;  %263 = vmatpush.msra.mxu3 %v238_v0  ;;  %v220_v3 = vld [vmem:[%s730_s3 + $0x68] sm:$0xff]  ;;  %v219_v7 = vld [vmem:[%s730_s3 + $0x60] sm:$0xff]  ;;  %vm73_vm5 = vcmask 785408   ;;  %vm75_vm6 = vcmask 793600   ;;  %v466_v50 = vmov 0  }
  0x11   :  { %40 = vadd.xlane.f32.xlu0 %v39_v13  ;;  %v237_v2 = vld [vmem:[%s730_s3 + $0xf0] sm:$0xff]  ;;  %244 = vmatpush.msra.mxu2 %v221_v1  ;;  %v235_v8 = vld [vmem:[%s730_s3 + $0xe0] sm:$0xff]  ;;  %v218_v10 = vld [vmem:[%s730_s3 + $0x58] sm:$0xff]  ;;  %vm283_vm8 = vcmask 23552   ;;  %s329_s10 = sshll.u32 %s733_s6, 4  ;;  %s330_s10 = int_to_ptr.hbm [resolvable:$true] %s329_s10 }
  0x12   :  { %194 = vmatpush.bf16.msra.mxu1 %v387_v31  ;;  %264 = vmatpush.msra.mxu3 %v237_v2  ;;  %v234_v11 = vld [vmem:[%s730_s3 + $0xd8] sm:$0xff]  ;;  %v217_v13 = vld [vmem:[%s730_s3 + $0x50] sm:$0xff]  ;;  %v216_v15 = vld [vmem:[%s730_s3 + $0x48] sm:$0xff] }
  0x13   :  { %182 = vmatpush.bf16.msra.mxu0 %v375_v35  ;;  %245 = vmatpush.msra.mxu2 %v220_v3  ;;  %v233_v14 = vld [vmem:[%s730_s3 + $0xd0] sm:$0xff]  ;;  %v232_v16 = vld [vmem:[%s730_s3 + $0xc8] sm:$0xff]  ;;  %v215_v18 = vld [vmem:[%s730_s3 + $0x40] sm:$0xff] }
  0x14   :  { %v231_v19 = vld [vmem:[%s730_s3 + $0xc0] sm:$0xff]  ;;  %v214_v20 = vld [vmem:[%s730_s3 + $0x38] sm:$0xff]  ;;  %v213_v24 = vld [vmem:[%s730_s3 + $0x30] sm:$0xff]  ;;  %430 = vset.pattern.permute.xlu0 %v466_v50 }
  0x15   :  { %246 = vmatpush.msra.mxu2 %v219_v7  ;;  %v230_v21 = vld [vmem:[%s730_s3 + $0xb8] sm:$0xff]  ;;  %v229_v25 = vld [vmem:[%s730_s3 + $0xb0] sm:$0xff]  ;;  %v212_v27 = vld [vmem:[%s730_s3 + $0x28] sm:$0xff] }
  0x16   :  { %195 = vmatpush.bf16.msra.mxu1 %v379_v37  ;;  %v228_v28 = vld [vmem:[%s730_s3 + $0xa8] sm:$0xff]  ;;  %v211_v31 = vld [vmem:[%s730_s3 + $0x20] sm:$0xff]  ;;  %v210_v34 = vld [vmem:[%s730_s3 + $0x18] sm:$0xff] }
  0x17   :  { %183 = vmatpush.bf16.msra.mxu0 %v367_v41  ;;  %247 = vmatpush.msra.mxu2 %v218_v10  ;;  %v227_v32 = vld [vmem:[%s730_s3 + $0xa0] sm:$0xff]  ;;  %v226_v35 = vld [vmem:[%s730_s3 + $0x98] sm:$0xff]  ;;  %vm404_vm7 = vmpackc.low %vm75_vm6, %vm75_vm6 }
  0x18   :  { %v225_v44 = vld [vmem:[%s730_s3 + $0x90] sm:$0xff]  ;;  %v208_v45 = vld [vmem:[%s730_s3 + $0x8] sm:$0xff]  ;;  %v223_v48 = vld [vmem:[%s730_s3 + $0x80] sm:$0xff] }
  0x19   :  { %248 = vmatpush.msra.mxu2 %v217_v13  ;;  %v224_v46 = vld [vmem:[%s730_s3 + $0x88] sm:$0xff]  ;;  %v61_v51 = vld [vmem:[%s729_s2] sm:$0x3]  ;;  %s467_s2 = smov [#allocation2]  }
  0x1a   :  { %196 = vmatpush.bf16.msra.mxu1 %v371_v43  ;;  %v95_v52 = vperm.slane %v61_v51, 0 }
  0x1b   :  { %184 = vmatpush.bf16.msra.mxu0 %v359_v47  ;;  %249 = vmatpush.msra.mxu2 %v216_v15  ;;  %v207_v47 = vld [vmem:[%s730_s3] sm:$0xff] }
  0x1d   :  { %250 = vmatpush.msra.mxu2 %v215_v18 }
  0x1e   :  { %197 = vmatpush.bf16.msra.mxu1 %v363_v49  ;;  %v296_v49 = vld [vmem:[%s732_s5] sm:$0xff] }
  0x1f   :  { %185 = vmatpush.bf16.msra.mxu0 %v351_v53  ;;  %251 = vmatpush.msra.mxu2 %v214_v20  ;;  %v96_v53 = vperm.slane %v61_v51, 1 }
  0x21   :  { %252 = vmatpush.msra.mxu2 %v213_v24 }
  0x22   :  { %63 = vrot.lane.b32.xlu1 %v24_v4, %s465_s0  ;;  %198 = vmatpush.bf16.msra.mxu1 %v355_v55  ;;  %v236_v4 = vld [vmem:[%s730_s3 + $0xe8] sm:$0xff] }
  0x23   :  { %186 = vmatpush.bf16.msra.mxu0 %v343_v58  ;;  %265 = vmatpush.msra.mxu3 %v236_v4  ;;  %v298_v4 = vand.u32 127, %v297_v63 }
  0x24   :  { %253 = vmatpush.msra.mxu2 %v212_v27 }
  0x25   :  { %266 = vmatpush.msra.mxu3 %v235_v8  ;;  %300 = vperm.xlu0 %430, %v296_v49  }
  0x26   :  { %199 = vmatpush.bf16.msra.mxu1 %v347_v62  ;;  %254 = vmatpush.msra.mxu2 %v211_v31  ;;  %v431_v62 = vld [vmem:[%s731_s4] ss:$0 sm:$0xff]  ;;  %s327_s4 = sshll.u32 %s467_s2, 4  ;;  %s328_s4 = int_to_ptr.vmem [resolvable:$true] %s327_s4 }
  0x27   :  { %267 = vmatpush.msra.mxu3 %v234_v11 }
  0x28   :  { %255 = vmatpush.msra.mxu2 %v210_v34 }
  0x29   :  { %268 = vmatpush.msra.mxu3 %v233_v14 }
  0x2b   :  { %269 = vmatpush.msra.mxu3 %v232_v16 }
  0x2d   :  { %270 = vmatpush.msra.mxu3 %v231_v19 }
  0x2f   :  { %271 = vmatpush.msra.mxu3 %v230_v21 }
  0x31   :  { %272 = vmatpush.msra.mxu3 %v229_v25 }
  0x33   :  { %273 = vmatpush.msra.mxu3 %v228_v28 }
  0x35   :  { %274 = vmatpush.msra.mxu3 %v227_v32 }
  0x37   :  { %275 = vmatpush.msra.mxu3 %v226_v35 }
  0x39   :  { %276 = vmatpush.msra.mxu3 %v225_v44 }
  0x3b   :  { %277 = vmatpush.msra.mxu3 %v224_v46 }
  0x3d   :  { %278 = vmatpush.msra.mxu3 %v223_v48 }
  0x64   :  { %v68_v37 = vpop.permute.xlu2 %67 }
  0x7c   :  { %v37_v61 = vpop.xlane.xlu0 %36  ;;  %v45_v17 = vpop.xlane.xlu1 %44 }
  0x84   :  { %v41_v6 = vpop.xlane.xlu0 %40 }
  0x85   :  { %v46_v9 = vmul.f32 %v41_v6, %v37_v61 }
  0x87   :  { %v47_v12 = vmax.f32 %v46_v9, 1e-12 }
  0x89   :  { %432 = vrsqrt.f32 %v47_v12  ;;  %vm54_vm3 = vweird.f32 %v47_v12 }
  0x8f   :  { %v433_v22 = vpop.eup %432 }
  0x90   :  { %v49_v23 = vmul.f32 %v433_v22, %v47_v12  ;;  %vm55_vm1 = vweird.f32 %v433_v22 }
  0x91   :  { %vm56_vm4 = vmor %vm54_vm3, %vm55_vm1 }
  0x92   :  { %v50_v26 = vmul.f32 %v433_v22, %v49_v23 }
  0x94   :  { %v51_v29 = vmul.f32 0.5, %v50_v26  ;;  %v64_v30 = vpop.permute.xlu1 %63 }
  0x95   :  { %v70_v36 = vsel %vm34_vm0, %v512_v5, %v64_v30  ;;  %v209_v5 = vld [vmem:[%s730_s3 + $0x10] sm:$0xff] }
  0x96   :  { %v52_v33 = vsub.f32 1.5, %v51_v29  ;;  %v72_v40 = vsel %vm71_vm2, %v70_v36, %v68_v37  ;;  %256 = vmatpush.msra.mxu2 %v209_v5 }
  0x97   :  { %v301_v6 = vpop.permute.xlu0 %300 }
  0x98   :  { %v53_v38 = vmul.f32 %v433_v22, %v52_v33  ;;  %257 = vmatpush.msra.mxu2 %v208_v45  ;;  %vm302_vm9 = vcmp.eq.s32.totalorder %v298_v4, %v301_v6 }
  0x9a   :  { %v57_v39 = vsel %vm56_vm4, %v433_v22, %v53_v38  ;;  %258 = vmatpush.msra.mxu2 %v207_v47 }
  0x9b   :  { %v58_v41 = vmul.f32 %v57_v39, %v45_v17 }
  0x9d   :  { %v74_v42 = vsel %vm73_vm5, %v72_v40, %v58_v41 }
  0x9e   :  { %v405_v43 = vpack.c.bf16 %v74_v42, %v74_v42 }
  0xa0   :  { %406 = vmatmul.msk.bf16.vlgmr.msra.gmra.mxu0 %vm404_vm7, %v405_v43  ;;  %409 = vmatmul.msk.bf16.vlgmr.msra.gmra.mxu1 %vm404_vm7, %v405_v43 }
 0x11d   :  { %v188_v54 = vpop.f32.mrf.mxu0  ;;  %v201_v55 = vpop.f32.mrf.mxu1 }
 0x11e   :  { %v189_v56 = vadd.f32 %v188_v54, %v95_v52  ;;  %v202_v57 = vadd.f32 %v201_v55, %v96_v53 }
 0x120   :  { %v205_v58 = vmax.f32 %v189_v56, 0.0  ;;  %v206_v59 = vmax.f32 %v202_v57, 0.0 }
 0x122   :  { %259 = vmatmul.f32.vlgmr.msra.gmra.mxu2 %v205_v58  ;;  %279 = vmatmul.f32.vlgmr.msra.gmra.mxu3 %v206_v59 }
 0x125   :  { %v190_v60 = vpop.f32.mrf.mxu0  ;;  %v203_v61 = vpop.f32.mrf.mxu1 }
 0x1a5   :  { %v260_v0 = vpop.f32.mrf.mxu2  ;;  %v280_v2 = vpop.f32.mrf.mxu3 }
 0x1a6   :  { %v261_v1 = vadd.f32 %v431_v62, %v260_v0 }
 0x1a8   :  { %v281_v3 = vadd.f32 %v280_v2, %v261_v1 }
 0x1aa   :  { %v284_v7 = vsel %vm283_vm8, %v281_v3, -inf  ;;  %v303_v8 = vsel %vm302_vm9, %v281_v3, 0.0 }
 0x1ab   :  { %285 = vmax.xlane.f32.xlu2 %v284_v7  ;;  %v304_v9 = vsel %vm283_vm8, %v303_v8, 0.0 }
 0x1b3   :  { %305 = vadd.xlane.f32.xlu2 %v304_v9 }
 0x21e   :  { %v286_v10 = vpop.xlane.xlu2 %285 }
 0x21f   :  { %v287_v11 = vsub.f32 %v281_v3, %v286_v10 }
 0x221   :  { %v288_v12 = vmul.f32 1.442695, %v287_v11 }
 0x223   :  { %434 = vpow2.f32 %v288_v12 }
 0x226   :  { %v306_v19 = vpop.xlane.xlu2 %305 }
 0x229   :  { %v435_v13 = vpop.eup %434 }
 0x22a   :  { %v290_v14 = vsel %vm283_vm8, %v435_v13, 0.0 }
 0x22b   :  { %291 = vadd.xlane.f32.xlu1 %v290_v14 }
 0x29e   :  { %v292_v15 = vpop.xlane.xlu1 %291 }
 0x29f   :  { %436 = vlog2.f32 %v292_v15 }
 0x2a5   :  { %v437_v16 = vpop.eup %436 }
 0x2a6   :  { %v294_v17 = vmul.f32 0.6931472, %v437_v16 }
 0x2a8   :  { %v295_v18 = vadd.f32 %v294_v17, %v286_v10 }
 0x2aa   :  { %v307_v20 = vsub.f32 %v295_v18, %v306_v19 }
 0x2ac   :  { %v315_v21 = vrot.slane %v307_v20, 4 }
 0x2ae   :  { %v316_v22 = vadd.f32 %v315_v21, %v307_v20 }
 0x2b0   :  { %v317_v23 = vrot.slane %v316_v22, 2 }
 0x2b2   :  { %v318_v24 = vadd.f32 %v317_v23, %v316_v22 }
 0x2b4   :  { %v319_v25 = vrot.slane %v318_v24, 1 }
 0x2b6   :  { %v320_v26 = vadd.f32 %v319_v25, %v318_v24 }
 0x2b8   :  { %321 = vst [vmem:[#allocation2] sm:$0xff] %v320_v26 }
 0x2b9   :  { %332 = dma.vmem_to_hbm [thread:$0]  %s328_s4, 128, %s330_s10, [#allocation3]  }
 0x2ba   :  { %462 = dma.done.wait [#allocation3], 128  }
 0x2bb   :  { %463 = vsyncadd [#allocation3], 4294967168 }
 0x2bc   :  { %337 = vsyncpa [#allocation3], 1 }

</bundles_post_ra>
